<compile_context>
chip_gen: v5e
topology: v5e:2x2
jax: 0.10.0
libtpu: 0.0.40
codegen_flags: <defaults>
</compile_context>

<pallas_src>
import functools

import jax
import jax.numpy as jnp
from jax.experimental import pallas as pl
from jax.experimental.pallas import tpu as pltpu


def _round_up(a, b):
    return (a + b - 1) // b * b


def _cdiv(a, b):
    return (a + b - 1) // b


def _vmem_capacity_bytes():
    """Per-core VMEM capacity; conservative 64 MiB fallback (v7x)."""
    try:
        info = pltpu.get_tpu_info()
        cap = int(getattr(info, "vmem_capacity_bytes", 0))
        if cap > 0:
            return cap
    except Exception:
        pass
    return 64 << 20


def temporal_conv_kernel(x_ref, w_ref, b_ref, o_ref, *, n_pad, compute_dtype,
                         approx_gate):
    """One row tile: fused (conv1 + x_p) / x_q matmul + GLU gate.

    x_ref : (tile_m, T*C_in)      input rows, native dtype (cast in-kernel)
    w_ref : (T*C_in, 2*n_pad)     fused block-Toeplitz weight, sections [sum|q]
    b_ref : (1, 2*n_pad)          fused bias (f32)
    o_ref : (tile_m, n_pad)       lane-dense output rows (first T_out*C_out valid)
    """
    x = x_ref[...]
    if x.dtype != compute_dtype:
        x = x.astype(compute_dtype)
    y = jnp.dot(x, w_ref[...], preferred_element_type=jnp.float32)
    y = y + b_ref[...]
    y_sum = y[:, :n_pad]          # conv1(X) + x_p  (weights/bias pre-summed)
    y_q = y[:, n_pad:]            # x_q
    e = jnp.exp(-y_q)             # EUP
    if approx_gate:
        gate = pl.reciprocal(1.0 + e, approx=True)   # EUP divide slot
    else:
        gate = 1.0 / (1.0 + e)
    o_ref[...] = (y_sum * gate).astype(o_ref.dtype)


def _build_fused_toeplitz(w1, b1, wc, bc, T, n_pad):
    """Embed both valid (1, K) convs into one block-Toeplitz matmul weight.

    conv1 is merged into the x_p half: section 0 = w1 + wc[:, :, :C_out],
    section 1 = wc[:, :, C_out:].  Each section is zero-padded to n_pad
    columns so section boundaries / output stores are 128-lane aligned.

    Returns
      w2d : (T*C_in, 2*n_pad)   columns (t_out major, c_out minor) per section
      b2d : (1, 2*n_pad)
    """
    K, C_in, C_out = w1.shape
    T_out = T - K + 1
    n_out = T_out * C_out

    w_sum = w1 + wc[:, :, :C_out]
    b_sum = b1 + bc[:C_out]
    w_sec = jnp.stack([w_sum, wc[:, :, C_out:]], axis=0)          # (2,K,C_in,C_out)
    b_sec = jnp.stack([b_sum, bc[C_out:]], axis=0)                # (2,C_out)

    delta = jnp.arange(T)[:, None] - jnp.arange(T_out)[None, :]   # t_in - t_out
    valid = (delta >= 0) & (delta < K)
    tap = jnp.clip(delta, 0, K - 1)
    w_g = w_sec[:, tap]                                   # (2, T, T_out, C_in, C_out)
    w_g = jnp.where(valid[None, :, :, None, None], w_g, 0.0)
    w_toe = jnp.transpose(w_g, (1, 3, 0, 2, 4))           # (T, C_in, 2, T_out, C_out)
    w2d = w_toe.reshape(T * C_in, 2, n_out)
    b2d = jnp.broadcast_to(b_sec[:, None, :], (2, T_out, C_out)).reshape(2, n_out)

    if n_pad != n_out:
        pad = n_pad - n_out
        w2d = jnp.pad(w2d, ((0, 0), (0, 0), (0, pad)))
        b2d = jnp.pad(b2d, ((0, 0), (0, pad)))
    return w2d.reshape(T * C_in, 2 * n_pad), b2d.reshape(1, 2 * n_pad)


def temporal_conv(x, w1, b1, wc, bc, *, tile_m=2048,
                  compute_dtype=jnp.bfloat16, out_dtype=None):
    """x: (B, N, T, C_in) -> (B, N, T-K+1, C_out).

    w1: (K, C_in, C_out)     conv1 weight (PyTorch (C_out, C_in, 1, K) transposed)
    b1: (C_out,)
    wc: (K, C_in, 2*C_out)   casual_conv weight
    bc: (2*C_out,)
    """
    B, N, T, C_in = x.shape
    K, _, C_out = w1.shape
    T_out = T - K + 1
    n_out = T_out * C_out
    n_pad = _round_up(n_out, 128)          # lane-dense sections / output
    K_in = T * C_in
    M = B * N
    out_dtype = x.dtype if out_dtype is None else out_dtype

    # Fused weight/bias (tiny); input passes through untouched (free reshape).
    w2d, b2d = _build_fused_toeplitz(w1, b1, wc, bc, T, n_pad)
    w2d = w2d.astype(compute_dtype)
    b2d = b2d.astype(jnp.float32)
    x2d = x.reshape(M, K_in)

    in_sz = jnp.dtype(x.dtype).itemsize
    c_sz = jnp.dtype(compute_dtype).itemsize
    o_sz = jnp.dtype(out_dtype).itemsize
    granule = 16 if c_sz < 4 else 8        # bf16 vregs pack (16, 128)

    # Per-generation VMEM budget (~70% of capacity: ~45 MiB v7x, ~90 MiB v5e/v6e).
    vmem_budget = int(_vmem_capacity_bytes() * 0.70)
    fixed_bytes = 2 * int(w2d.size) * c_sz + 2 * int(b2d.size) * 4
    per_row = (2 * K_in * in_sz          # double-buffered input block
               + K_in * c_sz             # in-kernel cast copy
               + 2 * n_pad * o_sz        # double-buffered output block
               + 16 * n_pad)             # f32 intermediates (y, gate)
    tile_budget = max(granule, (vmem_budget - fixed_bytes - (6 << 20)) // per_row)

    tm = max(granule, min(int(tile_m), int(tile_budget), _round_up(M, granule)))
    if M >= 2 * granule:                  # >=2 grid steps: both v7x cores + pipelining
        tm = min(tm, _round_up(_cdiv(M, 2), granule))
    tm = _round_up(tm, granule)
    grid = _cdiv(M, tm)                   # ragged M handled by Pallas edge blocks

    vmem_limit = fixed_bytes + tm * per_row + (8 << 20)
    vmem_limit = int(min(max(vmem_limit, 16 << 20), vmem_budget))

    kernel = functools.partial(
        temporal_conv_kernel, n_pad=n_pad, compute_dtype=compute_dtype,
        approx_gate=(jnp.dtype(compute_dtype) != jnp.dtype(jnp.float32)))

    out2d = pl.pallas_call(
        kernel,
        out_shape=jax.ShapeDtypeStruct((M, n_pad), out_dtype),
        grid_spec=pltpu.PrefetchScalarGridSpec(
            num_scalar_prefetch=0,
            grid=(grid,),
            in_specs=[
                pl.BlockSpec((tm, K_in), lambda i: (i, 0)),
                pl.BlockSpec((K_in, 2 * n_pad), lambda i: (0, 0)),
                pl.BlockSpec((1, 2 * n_pad), lambda i: (0, 0)),
            ],
            out_specs=pl.BlockSpec((tm, n_pad), lambda i: (i, 0)),
        ),
        compiler_params=pltpu.CompilerParams(
            dimension_semantics=("parallel",),
            vmem_limit_bytes=vmem_limit),
    )(x2d, w2d, b2d)

    out = out2d[:, :n_out] if n_pad != n_out else out2d
    return out.reshape(B, N, T_out, C_out)


def reference_temporal_conv(x, w1, b1, wc, bc):
    """Plain-JAX reference mirroring the PyTorch forward semantics."""
    B, N, T, C_in = x.shape
    K, _, C_out = w1.shape
    T_out = T - K + 1
    acc1 = jnp.zeros((B, N, T_out, C_out), jnp.float32)
    accc = jnp.zeros((B, N, T_out, 2 * C_out), jnp.float32)
    for k in range(K):
        xs = x[:, :, k:k + T_out, :]
        acc1 = acc1 + jnp.einsum("bntc,co->bnto", xs, w1[k])
        accc = accc + jnp.einsum("bntc,co->bnto", xs, wc[k])
    temp = acc1 + b1
    causal = accc + bc
    x_p = causal[..., :C_out]
    x_q = causal[..., C_out:]
    return (x_p + temp) * jax.nn.sigmoid(x_q)


if __name__ == "__main__":
    # small shapes: batch=2, nodes=16, seq=8, in_channels=4, out_channels=8, K=3
    B, N, T = 2, 16, 8
    C_in, C_out, K = 4, 8, 3

    key = jax.random.PRNGKey(0)
    kx, k1, kb1, kc, kbc = jax.random.split(key, 5)

    x = jax.random.normal(kx, (B, N, T, C_in), dtype=jnp.float32)

    # deterministic param init (Conv2d weight (C_out, C_in, 1, K) stored here
    # pre-transposed as (K, C_in, C_out); bias (C_out,))
    fan_in = C_in * K
    bound = 1.0 / (fan_in ** 0.5)
    w1 = jax.random.uniform(k1, (K, C_in, C_out), jnp.float32, -bound, bound)
    b1 = jax.random.uniform(kb1, (C_out,), jnp.float32, -bound, bound)
    wc = jax.random.uniform(kc, (K, C_in, 2 * C_out), jnp.float32, -bound, bound)
    bc = jax.random.uniform(kbc, (2 * C_out,), jnp.float32, -bound, bound)

    ref = reference_temporal_conv(x, w1, b1, wc, bc)

    # f32 compute path: tight check against the reference (exact gate).
    out_f32 = jax.block_until_ready(
        temporal_conv(x, w1, b1, wc, bc, compute_dtype=jnp.float32))
    assert out_f32.shape == (B, N, T - K + 1, C_out)
    assert jnp.allclose(out_f32, ref, atol=1e-5, rtol=1e-5)

    # default path (bf16 MXU, f32 accumulation, approx EUP reciprocal): loose check.
    out = jax.block_until_ready(temporal_conv(x, w1, b1, wc, bc))
    assert out.shape == (B, N, T - K + 1, C_out)
    assert jnp.allclose(out, ref, atol=5e-2, rtol=5e-2)

    print("KERNEL_OK")
</pallas_src>

<mosaic_0001>
module attributes {stable_mosaic.version = 11 : i64} {
  func.func @temporal_conv_kernel(%arg0: i32, %arg1: memref<16x32xf32, #tpu.memory_space<vmem>>, %arg2: memref<32x256xf32, #tpu.memory_space<vmem>>, %arg3: memref<1x256xf32, #tpu.memory_space<vmem>>, %arg4: memref<16x128xf32, #tpu.memory_space<vmem>>) attributes {dimension_semantics = [#tpu.dimension_semantics<parallel>], iteration_bounds = array<i64: 2>, scalar_prefetch = 0 : i64, scratch_operands = 0 : i64, tpu.core_type = #tpu.core_type<tc>, window_params = [{transform_indices = @transform_0, window_bounds = array<i64: 16, 32>}, {pipeline_mode = #tpu.pipeline_mode<synchronous>, transform_indices = @transform_1, window_bounds = array<i64: 32, 256>}, {pipeline_mode = #tpu.pipeline_mode<synchronous>, transform_indices = @transform_2, window_bounds = array<i64: 1, 256>}, {transform_indices = @transform_3, window_bounds = array<i64: 16, 128>}]} {
    %c0 = arith.constant 0 : index
    %c0_0 = arith.constant 0 : index
    %0 = vector.load %arg1[%c0, %c0_0] : memref<16x32xf32, #tpu.memory_space<vmem>>, vector<16x32xf32>
    %c0_1 = arith.constant 0 : index
    %c0_2 = arith.constant 0 : index
    %1 = vector.load %arg2[%c0_1, %c0_2] : memref<32x256xf32, #tpu.memory_space<vmem>>, vector<32x256xf32>
    %cst = arith.constant dense<0.000000e+00> : vector<16x256xf32>
    %2 = tpu.matmul %0, %1, %cst {dimension_numbers = #tpu.dot_dimension_numbers<[1], [0], [0], [1], [0, 0, 1, 1], [], []>} : vector<16x32xf32>, vector<32x256xf32>, vector<16x256xf32> -> vector<16x256xf32>
    %c0_3 = arith.constant 0 : index
    %c0_4 = arith.constant 0 : index
    %3 = vector.load %arg3[%c0_3, %c0_4] : memref<1x256xf32, #tpu.memory_space<vmem>>, vector<1x256xf32>
    %4 = vector.broadcast %3 : vector<1x256xf32> to vector<16x256xf32>
    %5 = arith.addf %2, %4 : vector<16x256xf32>
    %6 = vector.extract_strided_slice %5 {offsets = [0, 0], sizes = [16, 128], strides = [1, 1]} : vector<16x256xf32> to vector<16x128xf32>
    %7 = vector.extract_strided_slice %5 {offsets = [0, 128], sizes = [16, 128], strides = [1, 1]} : vector<16x256xf32> to vector<16x128xf32>
    %cst_5 = arith.constant 0.000000e+00 : f32
    %8 = vector.broadcast %cst_5 : f32 to vector<16x128xf32>
    %9 = arith.subf %8, %7 : vector<16x128xf32>
    %10 = math.exp %9 : vector<16x128xf32>
    %cst_6 = arith.constant 1.000000e+00 : f32
    %11 = vector.broadcast %cst_6 : f32 to vector<16x128xf32>
    %12 = arith.addf %11, %10 : vector<16x128xf32>
    %cst_7 = arith.constant 1.000000e+00 : f32
    %13 = vector.broadcast %cst_7 : f32 to vector<16x128xf32>
    %14 = arith.divf %13, %12 : vector<16x128xf32>
    %15 = arith.mulf %6, %14 : vector<16x128xf32>
    %c0_8 = arith.constant 0 : index
    %c0_9 = arith.constant 0 : index
    %16 = vector.load %arg4[%c0_8, %c0_9] : memref<16x128xf32, #tpu.memory_space<vmem>>, vector<16x128xf32>
    tpu.vector_store %arg4[%c0_8, %c0_9], %15 {strides = array<i32>} : memref<16x128xf32, #tpu.memory_space<vmem>>, vector<16x128xf32>,
    return
  }
  func.func @transform_0(%arg0: i32) -> (i32, i32) {
    %c0_i32 = arith.constant 0 : i32
    %c0_i32_0 = arith.constant 0 : i32
    return %arg0, %c0_i32 : i32, i32
  }
  func.func @transform_1(%arg0: i32) -> (i32, i32) {
    %c0_i32 = arith.constant 0 : i32
    %c0_i32_0 = arith.constant 0 : i32
    %c0_i32_1 = arith.constant 0 : i32
    return %c0_i32, %c0_i32_0 : i32, i32
  }
  func.func @transform_2(%arg0: i32) -> (i32, i32) {
    %c0_i32 = arith.constant 0 : i32
    %c0_i32_0 = arith.constant 0 : i32
    %c0_i32_1 = arith.constant 0 : i32
    return %c0_i32, %c0_i32_0 : i32, i32
  }
  func.func @transform_3(%arg0: i32) -> (i32, i32) {
    %c0_i32 = arith.constant 0 : i32
    %c0_i32_0 = arith.constant 0 : i32
    return %arg0, %c0_i32 : i32, i32
  }
}

</mosaic_0001>

<bundles_post_ra>
// kernel: tpu_custom_call.1
= control target key start
LH: loop header
LB: loop body
LE: loop exit
PB: predicated region body
PF: predicated region fallthrough
CT: control target
= control target key end

     0   :  { %8 = vsyncpa [#allocation3], 0  ;;  %s891_s0 = inlined_call_operand.hbm [shape: f32[32,32], index: 0, kind: input, shape index: {}]   ;;  %s892_s1 = inlined_call_operand.hbm [shape: f32[32,256], index: 1, kind: input, shape index: {}]   ;;  %s893_s2 = inlined_call_operand.hbm [shape: f32[1,256], index: 2, kind: input, shape index: {}]   ;;  %s894_s3 = inlined_call_operand.hbm [shape: f32[32,128], index: 3, kind: output, shape index: {}]  }
   0x1   :  { %10 = vsyncpa [#allocation3 + $0x1], 0 }
   0x2   :  { %11 = vsyncpa [#allocation6], 0 }
   0x3   :  { %12 = vsyncpa [#allocation4], 0 }
   0x4   :  { %14 = vsyncpa [#allocation4 + $0x1], 0  ;;  %s746_s12 = smov 0   ;;  %s748_s13 = smov 0  }
   0x5   :  { %s750_s14 = smov 0   ;;  %s752_s15 = smov 0  }
   0x6 LB: > { %s767_s16 = sadd.s32 4294967295, %s716_s15   ;;  %s443_s17 = sadd.s32 4294967294, %s716_s15   ;;  %s716_s15 = sphi %s752_s15, %s904_s15   ;;  %s712_s14 = sphi %s750_s14, %s903_s14   ;;  %s708_s13 = sphi %s748_s13, %s902_s13   ;;  %s704_s12 = sphi %s746_s12, %s901_s12  }
   0x7   : > { %p40_p0 = scmp.ne.s32.totalorder %s708_s13, %s704_s12  ;;  %p41_p1 = scmp.eq.s32.totalorder %s767_s16, 0 }
   0x8   : > { %p106_p2 = scmp.eq.s32.totalorder %s767_s16, 1  ;;  %p112_p3 = scmp.eq.s32.totalorder %s443_s17, 1 }
   0x9   : > { %p776_p4 = por %p41_p1, %p40_p0  ;;  %p444_p5 = scmp.ge.s32.totalorder %s716_s15, 1 }
   0xa   : > { %p781_p6 = por %p112_p3, %p40_p0  ;;  %p119_p7 = scmp.lt.s32.totalorder %s716_s15, 3 }
   0xb   : > { %s130_s22 = sshll.u32 %s892_s1, 4  ;;  %s718_s24 = smov [#allocation5]   ;;  %s131_s22 = int_to_ptr.hbm [resolvable:$true] %s130_s22 }
   0xc   : > { %p789_p8 = pnand %p444_p5, %p119_p7  ;;  %s132_s25 = sshll.u32 %s718_s24, 4  ;;  %s133_s25 = int_to_ptr.vmem [resolvable:$true] %s132_s25 }
   0xd   : > { %s145_s28 = sshll.u32 %s893_s2, 4  ;;  %s719_s29 = smov 256   ;;  %s146_s28 = int_to_ptr.hbm [resolvable:$true] %s145_s28 }
   0xe   : > { %p487_p9 = pneg %p789_p8  ;;  %s720_s30 = smov 16  }
   0xf   : > { %s721_s4 = smov [#allocation7]   ;;  %s802_s6 = sadd.s32 1, %s716_s15  }
  0x10   : > { %p488_p10 = pnand %p487_p9, %p41_p1  ;;  %s147_s5 = sshll.u32 %s721_s4, 4  ;;  %s148_s5 = int_to_ptr.vmem [resolvable:$true] %s147_s5 }
  0x11   : > { %s27_s7 = sadd.s32 1, %s712_s14  ;;  %s24_s8 = ssub.s32 %s716_s15, %s802_s6 }
  0x12   : > { %490 = dma.hbm_to_vmem [thread:$0]  (!%p488_p10), %s131_s22, 1024, %s133_s25, [#allocation6], %s719_s29, %s719_s29, %s720_s30  }
  0x13   : > { %493 = dma.hbm_to_vmem [thread:$0]  (!%p488_p10), %s146_s28, 32, %s148_s5, [#allocation6]  }
  0x14   : > { %p34_p12 = scmp.ne.s32.totalorder %s712_s14, %s708_s13  ;;  %p25_p13 = scmp.eq.s32.totalorder %s24_s8, 0 }
  0x15   : > { %p35_p0 = scmp.eq.s32.totalorder %s716_s15, 0  ;;  %p504_p5 = scmp.lt.s32.totalorder %s716_s15, 2 }
  0x16   : > { %p812_p3 = por %p106_p2, %p34_p12  ;;  %s158_s11 = sand.u32 1, %s712_s14  }
  0x17   : > { %s818_s10 = scalar_select %p25_p13, %s712_s14, %s27_s7  }
  0x18   : > { %p36_p7 = por %p35_p0, %p34_p12  ;;  %s448_s17 = sshll.u32 %s158_s11, 4 }
  0x19   : > { %s465_s20 = sshll.u32 %s716_s15, 4  ;;  %s162_s25 = scalar_lea.vmem [#allocation2], %s448_s17 }
  0x1a   : > { %s167_s24 = scalar_lea.hbm %s891_s0, %s465_s20  ;;  %s170_s26 = sshll.u32 %s162_s25, 4  ;;  %s171_s26 = int_to_ptr.vmem [resolvable:$true] %s170_s26 }
  0x1b   : > { %s168_s27 = sshll.u32 %s167_s24, 4  ;;  %p825_p2 = pnand %p504_p5, %p36_p7  ;;  %s169_s27 = int_to_ptr.hbm [resolvable:$true] %s168_s27 }
  0x1c   : > { %s159_s29 = scalar_lea.sflag [#allocation3], %s158_s11  ;;  %s616_s30 = sshra.s32 %s169_s27, 4  ;;  %s617_s30 = int_to_ptr.hbm [resolvable:$true] %s616_s30 }
  0x1d   : > { %s618_s4 = scalar_lea.hbm %s617_s30, 16  ;;  %p620_p10 = pneg %p825_p2 }
  0x1e   : > { %p619_p9 = scmp.ne.s32.totalorder %s617_s30, %s618_s4  ;;  %s623_s8 = scalar_lea.hbm %s891_s0, 32 }
  0x1f   : > { %p624_p0 = scmp.lt.s32.totalorder %s617_s30, %s891_s0  ;;  %p625_p5 = scmp.lt.s32.totalorder %s623_s8, %s618_s4 }
  0x20   : > { %p621_p12 = pnand %p620_p10, %p619_p9 }
  0x21   : > { %p626_p7 = por %p625_p5, %p624_p0 }
  0x22   : > { %p622_p13 = pneg %p621_p12 }
  0x24   : > { %p627_p11 = pnand %p626_p7, %p622_p13 }
  0x26   : > { %630 = shalt.err (!%p627_p11)
}
  0x27   : > { %s722_s11 = smov 128   ;;  %s723_s21 = smov 8  }
  0x28   : > { %497 = dma.hbm_to_vmem [thread:$0]  (!%p825_p2), %s169_s27, 256, %s171_s26, %s159_s29, %s722_s11, %s722_s11, %s723_s21  }
  0x29   : > { %182 = sbr.rel (%p789_p8) target bundleno = 227 (0xe3), region = 32  ;;  %s842_s22 = sand.u32 (!%p789_p8), 1, %s708_s13  }
  0x2a   : > { %s452_s24 = sshll.u32 (!%p789_p8), %s842_s22, 4  ;;  %s185_s25 = scalar_lea.sflag (!%p789_p8), [#allocation3], %s842_s22 }
  0x2b   : > { %s188_s30 = scalar_lea.vmem (!%p789_p8), [#allocation2], %s452_s24 }
  0x2e   : > { %691 = dma.done.wait (%p776_p4), %s185_s25, 256  }
  0x2f   : > { %693 = vsyncadd (%p776_p4), %s185_s25, 4294967040 }
  0x30   : > { %695 = dma.done.wait (%p41_p1), [#allocation6], 1056  }
  0x31   : > { %697 = vsyncadd (%p41_p1), [#allocation6], 4294966240  ;;  %v233_v0 = vld [vmem:[#allocation5 + $0x38] sm:$0xff]  ;;  %v231_v1 = vld [vmem:[#allocation5 + $0x28] sm:$0xff]  ;;  %vm240_vm0 = vcmask 261120   ;;  %s466_s18 = sshll.u32 %s767_s16, 4 }
  0x32   : > { %282 = vmatpush.msra.mxu1 %v233_v0  ;;  %471 = vmatpush.msra.mxu3 %v233_v0  ;;  %v229_v2 = vld [vmem:[#allocation5 + $0x18] sm:$0xff]  ;;  %v232_v3 = vld [vmem:[#allocation5 + $0x30] sm:$0xff]  ;;  %v230_v4 = vld [vmem:[#allocation5 + $0x20] sm:$0xff]  ;;  %s347_s27 = scalar_lea.hbm %s894_s3, %s466_s18  ;;  %s221_s28 = scalar_lea.vmem [#allocation8], %s452_s24 }
  0x33   : > { %v227_v5 = vld [vmem:[#allocation5 + $0x8] sm:$0xff]  ;;  %259 = vmatpush.msra.mxu0 %v232_v3  ;;  %467 = vmatpush.msra.mxu2 %v232_v3  ;;  %v224_v6 = vld [vmem:[%s188_s30] sm:$0xff]  ;;  %s348_s16 = sshll.u32 %s221_s28, 4  ;;  %s350_s29 = sshll.u32 %s347_s27, 4  ;;  %s349_s16 = int_to_ptr.vmem [resolvable:$true] %s348_s16  ;;  %s351_s29 = int_to_ptr.hbm [resolvable:$true] %s350_s29 }
  0x34   : > { %283 = vmatpush.msra.mxu1 %v231_v1  ;;  %472 = vmatpush.msra.mxu3 %v231_v1  ;;  %v225_v7 = vld [vmem:[%s188_s30 + $0x8] sm:$0xff]  ;;  %v228_v8 = vld [vmem:[#allocation5 + $0x10] sm:$0xff]  ;;  %v226_v9 = vld [vmem:[#allocation5] sm:$0xff]  ;;  %s336_s4 = scalar_lea.sflag [#allocation4], %s842_s22  ;;  %s660_s5 = sshra.s32 %s351_s29, 4  ;;  %s661_s5 = int_to_ptr.hbm [resolvable:$true] %s660_s5 }
  0x35   : > { %260 = vmatpush.msra.mxu0 %v230_v4  ;;  %468 = vmatpush.msra.mxu2 %v230_v4  ;;  %v234_v10 = vld [vmem:[#allocation7] sm:$0x3]  ;;  %s662_s7 = scalar_lea.hbm %s661_s5, 16  ;;  %s666_s20 = scalar_lea.hbm %s894_s3, 32 }
  0x36   : > { %284 = vmatpush.msra.mxu1 %v229_v2  ;;  %473 = vmatpush.msra.mxu3 %v229_v2  ;;  %v237_v11 = vperm.slane %v234_v10, 1  ;;  %v236_v26 = vperm.slane %v234_v10, 0  ;;  %p663_p1 = scmp.ne.s32.totalorder %s661_s5, %s662_s7  ;;  %p667_p11 = scmp.lt.s32.totalorder %s661_s5, %s894_s3 }
  0x37   : > { %261 = vmatpush.msra.mxu0 %v228_v8  ;;  %469 = vmatpush.msra.mxu2 %v228_v8  ;;  %p668_p2 = scmp.lt.s32.totalorder %s666_s20, %s662_s7 }
  0x38   : > { %285 = vmatpush.msra.mxu1 %v227_v5  ;;  %474 = vmatpush.msra.mxu3 %v227_v5  ;;  %p664_p4 = pnand %p663_p1, %p812_p3 }
  0x39   : > { %458 = vmatmul.msk.f32.vlgmr.msra.gmra.mxu1 %vm240_vm0, %v224_v6  ;;  %459 = vmatmul.msk.f32.vlgmr.msra.gmra.mxu3 %vm240_vm0, %v225_v7  ;;  %p669_p9 = por %p668_p2, %p667_p11 }
  0x3a   : > { %262 = vmatpush.msra.mxu0 %v226_v9  ;;  %470 = vmatpush.msra.mxu2 %v226_v9  ;;  %p665_p8 = pneg %p664_p4 }
  0x3b   : > { %456 = vmatmul.msk.f32.vlgmr.msra.gmra.mxu0 %vm240_vm0, %v224_v6  ;;  %457 = vmatmul.msk.f32.vlgmr.msra.gmra.mxu2 %vm240_vm0, %v225_v7 }
  0x3c   : > { %p670_p10 = pnand %p669_p9, %p665_p8 }
  0xb6   : > { %v287_v12 = vpop.f32.mrf.mxu1 }
  0xb7   : > { %v288_v13 = vadd.f32 %v287_v12, %v237_v11 }
  0xb8   : > { %v264_v28 = vpop.f32.mrf.mxu0 }
  0xb9   : > { %v293_v14 = vsub.f32 0.0, %v288_v13  ;;  %v265_v33 = vadd.f32 %v264_v28, %v236_v26 }
  0xbb   : > { %v295_v15 = vmul.f32 1.442695, %v293_v14 }
  0xbc   : > { %v290_v16 = vpop.f32.mrf.mxu3 }
  0xbd   : > { %548 = vpow2.f32 %v295_v15  ;;  %v291_v17 = vadd.f32 %v290_v16, %v237_v11 }
  0xbe   : > { %v267_v40 = vpop.f32.mrf.mxu2 }
  0xbf   : > { %v294_v18 = vsub.f32 0.0, %v291_v17  ;;  %v268_v45 = vadd.f32 %v267_v40, %v236_v26 }
  0xc1   : > { %v297_v19 = vmul.f32 1.442695, %v294_v18 }
  0xc3   : > { %v549_v20 = vpop.eup %548  ;;  %550 = vpow2.f32 %v297_v19 }
  0xc4   : > { %v299_v21 = vadd.f32 1.0, %v549_v20 }
  0xc6   : > { %552 = vrcp.f32 %v299_v21  ;;  %v312_v29 = vand.u32 2147483648, %v299_v21  ;;  %vm306_vm1 = vweird.f32 %v299_v21  ;;  %v310_v31 = vand.u32 2147483647, %v299_v21 }
  0xc8   : > { %v313_v36 = vor.u32 1.1754944e-38, %v312_v29  ;;  %vm311_vm4 = vcmp.eq.f32.partialorder %v310_v31, 8.507059e+37 }
  0xc9   : > { %v551_v22 = vpop.eup %550 }
  0xca   : > { %v300_v23 = vadd.f32 1.0, %v551_v22 }
  0xcc   : > { %v553_v24 = vpop.eup %552  ;;  %554 = vrcp.f32 %v300_v23  ;;  %v327_v41 = vand.u32 2147483648, %v300_v23  ;;  %v325_v44 = vand.u32 2147483647, %v300_v23  ;;  %vm321_vm6 = vweird.f32 %v300_v23 }
  0xcd   : > { %v302_v25 = vmul.f32 %v553_v24, %v299_v21  ;;  %vm307_vm2 = vweird.f32 %v553_v24 }
  0xce   : > { %vm308_vm3 = vmor %vm306_vm1, %vm307_vm2  ;;  %v328_v47 = vor.u32 1.1754944e-38, %v327_v41  ;;  %vm326_vm8 = vcmp.eq.f32.partialorder %v325_v44, 8.507059e+37 }
  0xcf   : > { %v303_v27 = vsub.f32 1.0, %v302_v25 }
  0xd1   : > { %v304_v30 = vmul.f32 %v553_v24, %v303_v27 }
  0xd2   : > { %v555_v32 = vpop.eup %554 }
  0xd3   : > { %v305_v34 = vadd.f32 %v553_v24, %v304_v30  ;;  %v317_v35 = vmul.f32 %v555_v32, %v300_v23  ;;  %vm322_vm5 = vweird.f32 %v555_v32 }
  0xd4   : > { %vm323_vm7 = vmor %vm321_vm6, %vm322_vm5 }
  0xd5   : > { %v309_v37 = vsel %vm308_vm3, %v553_v24, %v305_v34  ;;  %v318_v38 = vsub.f32 1.0, %v317_v35 }
  0xd6   : > { %v314_v39 = vsel %vm311_vm4, %v313_v36, %v309_v37 }
  0xd7   : > { %v331_v42 = vmul.f32 %v314_v39, %v265_v33  ;;  %v319_v43 = vmul.f32 %v555_v32, %v318_v38 }
  0xd9   : > { %333 = vst [vmem:[%s221_s28] sm:$0xff] %v331_v42  ;;  %v320_v46 = vadd.f32 %v555_v32, %v319_v43 }
  0xdb   : > { %v324_v48 = vsel %vm323_vm7, %v555_v32, %v320_v46 }
  0xdc   : > { %v329_v49 = vsel %vm326_vm8, %v328_v47, %v324_v48 }
  0xdd   : > { %v332_v50 = vmul.f32 %v329_v49, %v268_v45 }
  0xdf   : > { %334 = vst [vmem:[%s221_s28 + $0x8] sm:$0xff] %v332_v50 }
  0xe0   : > { %673 = shalt.err (!%p670_p10)
}
  0xe1   : > { %s724_s22 = smov 128   ;;  %s725_s24 = smov 8  }
  0xe2   : > { %485 = dma.vmem_to_hbm [thread:$0]  (%p812_p3), %s349_s16, 256, %s351_s29, %s336_s4, %s724_s22, %s724_s22, %s725_s24  }
  0xe3 PF: > { %s365_s25 = sand.u32 1, %s704_s12   ;;  %p900_p12 = scmp.ge.s32.totalorder %s716_s15, 2 }
  0xe4   : > { %s366_s30 = scalar_lea.sflag [#allocation4], %s365_s25 }
  0xe5   : > { %p499_p13 = pnand %p900_p12, %p781_p6 }
  0xe7   : > { %p500_p0 = pneg %p499_p13 }
  0xe9   : > { %699 = dma.done.wait (%p500_p0), %s366_s30, 256  }
  0xea   : > { %701 = vsyncadd (%p500_p0), %s366_s30, 4294967040  ;;  %p17_p5 = scmp.ge.s32.totalorder %s802_s6, 4   ;;  %s901_s12 = smov %s708_s13 }
  0xeb   : > { %s902_s13 = smov %s712_s14  ;;  %s903_s14 = smov %s818_s10 }
  0xec   : > { %s904_s15 = smov %s802_s6  ;;  %19 = sbr.rel (!%p17_p5) target bundleno = 6 (0x6), region = 85 }
  0xf1   :  { %372 = vsyncpa [#allocation3], 1 }
  0xf2   :  { %374 = vsyncpa [#allocation3 + $0x1], 1 }
  0xf3   :  { %375 = vsyncpa [#allocation6], 1 }
  0xf4   :  { %376 = vsyncpa [#allocation4], 1 }
  0xf5   :  { %378 = vsyncpa [#allocation4 + $0x1], 1 }

</bundles_post_ra>
